<compile_context>
chip_gen: v6e
topology: v6e:2x2x1
jax: 0.10.0
libtpu: 0.0.40
codegen_flags: <defaults>
</compile_context>

<pallas_src>
import functools

import numpy as np
import jax
import jax.numpy as jnp
from jax.experimental import pallas as pl
from jax.experimental.pallas import tpu as pltpu


def _conv3x3_kernel(x_ref, w_ref, m_ref, b_ref, o_ref, *, H, W):
    # x_ref: (N*C, H*W)      flattened NCHW input (each row = one image plane)
    # w_ref: (9, N*C, N*C)   block-diagonal per-tap weights, tap t = kh*3+kw
    # m_ref: (9, 1, H*W)     0/1 zero-padding masks per tap (static, precomputed)
    # b_ref: (N*C, 1)        bias column (bias tiled over batch)
    # o_ref: (N*C, H*W)      output
    HW = H * W
    x = x_ref[...]

    # Center tap (dh = dw = 0): no shift, no mask.
    acc = jnp.dot(w_ref[4], x, preferred_element_type=jnp.float32)

    for kh in range(3):
        dh = kh - 1
        for kw in range(3):
            dw = kw - 1
            if dh == 0 and dw == 0:
                continue
            t = kh * 3 + kw
            s = dh * W + dw                     # flat offset of this tap
            # shifted[r, p] == x[r, p + s] before masking; rolls stay within
            # each row, i.e. within one image plane.
            shifted = pltpu.roll(x, (-s) % HW, 1)
            masked = shifted * m_ref[t]          # (1, HW) mask broadcasts over rows
            acc = acc + jnp.dot(w_ref[t], masked,
                                preferred_element_type=jnp.float32)

    o_ref[...] = (acc + b_ref[...]).astype(o_ref.dtype)


def _boundary_masks(H, W):
    """(9, 1, H*W) float32 0/1 masks implementing zero padding, built on host."""
    pos = np.arange(H * W)
    row = pos // W
    col = pos % W
    masks = np.zeros((9, 1, H * W), np.float32)
    for kh in range(3):
        for kw in range(3):
            dh, dw = kh - 1, kw - 1
            rr, cc = row + dh, col + dw
            valid = (rr >= 0) & (rr < H) & (cc >= 0) & (cc < W)
            masks[kh * 3 + kw, 0] = valid.astype(np.float32)
    return masks


@jax.jit
def invertible_conv_forward(x_nchw, weight_oihw, bias):
    """Forward pass matching nn.Conv2d(C, C, kernel_size=3, padding=1).

    x_nchw:      (N, C, H, W)
    weight_oihw: (C, C, 3, 3)   (out, in, kh, kw) — PyTorch layout
    bias:        (C,)
    returns:     (N, C, H, W)
    """
    N, C, H, W = x_nchw.shape
    HW = H * W
    NC = N * C

    # Free contiguous reshape: each row is one flattened (n, c) image plane.
    x_flat = x_nchw.reshape(NC, HW)

    # Per-tap weights (9, C, C), then block-diagonal over batch: (9, N*C, N*C).
    w_taps = jnp.transpose(weight_oihw, (2, 3, 0, 1)).reshape(9, C, C)
    eye_n = jnp.eye(N, dtype=weight_oihw.dtype)
    w_bd = jnp.einsum("nm,tij->tnimj", eye_n, w_taps).reshape(9, NC, NC)

    b_col = jnp.tile(bias, (N,)).reshape(NC, 1)

    masks = jnp.asarray(_boundary_masks(H, W))   # static constant (9, 1, HW)

    out_flat = pl.pallas_call(
        functools.partial(_conv3x3_kernel, H=H, W=W),
        out_shape=jax.ShapeDtypeStruct((NC, HW), x_nchw.dtype),
        grid=(1,),
        in_specs=[
            pl.BlockSpec((NC, HW), lambda i: (0, 0)),        # input planes
            pl.BlockSpec((9, NC, NC), lambda i: (0, 0, 0)),  # block-diag weights
            pl.BlockSpec((9, 1, HW), lambda i: (0, 0, 0)),   # boundary masks
            pl.BlockSpec((NC, 1), lambda i: (0, 0)),         # bias
        ],
        out_specs=pl.BlockSpec((NC, HW), lambda i: (0, 0)),
    )(x_flat, w_bd, masks, b_col)

    return out_flat.reshape(N, C, H, W)


if __name__ == "__main__":
    # Small shapes consistent with the module: batch=2, channels=4, spatial=16.
    N, C, H, W = 2, 4, 16, 16

    key = jax.random.PRNGKey(0)
    kx, kw, kb = jax.random.split(key, 3)

    x = jax.random.normal(kx, (N, C, H, W), dtype=jnp.float32)
    # Deterministic parameter init (shapes per nn.Conv2d(C, C, 3, padding=1)).
    fan_in = C * 3 * 3
    weight = jax.random.uniform(kw, (C, C, 3, 3), dtype=jnp.float32,
                                minval=-1.0, maxval=1.0) / jnp.sqrt(fan_in)
    bias = jax.random.uniform(kb, (C,), dtype=jnp.float32,
                              minval=-1.0, maxval=1.0) / jnp.sqrt(fan_in)

    out = invertible_conv_forward(x, weight, bias)
    out = jax.block_until_ready(out)

    # Sanity check against XLA's conv (same semantics as torch.nn.Conv2d).
    ref = jax.lax.conv_general_dilated(
        x, weight, window_strides=(1, 1), padding=((1, 1), (1, 1)),
        dimension_numbers=("NCHW", "OIHW", "NCHW")) + bias.reshape(1, C, 1, 1)
    assert out.shape == (N, C, H, W)
    assert jnp.allclose(out, ref, atol=1e-4, rtol=1e-4), "mismatch vs reference conv"

    # TODO(synk): the module's `inverse()` method (conv with weight.inverse())
    # is not part of forward() and is not implemented here.
    print("KERNEL_OK")
</pallas_src>

<mosaic_0001>
module attributes {stable_mosaic.version = 11 : i64} {
  func.func @_conv3x3_kernel(%arg0: i32, %arg1: memref<8x256xf32, #tpu.memory_space<vmem>>, %arg2: memref<9x8x8xf32, #tpu.memory_space<vmem>>, %arg3: memref<9x1x256xf32, #tpu.memory_space<vmem>>, %arg4: memref<8x1xf32, #tpu.memory_space<vmem>>, %arg5: memref<8x256xf32, #tpu.memory_space<vmem>>) attributes {dimension_semantics = [#tpu.dimension_semantics<arbitrary>], iteration_bounds = array<i64: 1>, scalar_prefetch = 0 : i64, scratch_operands = 0 : i64, tpu.core_type = #tpu.core_type<tc>, window_params = [{pipeline_mode = #tpu.pipeline_mode<synchronous>, transform_indices = @transform_0, window_bounds = array<i64: 8, 256>}, {pipeline_mode = #tpu.pipeline_mode<synchronous>, transform_indices = @transform_1, window_bounds = array<i64: 9, 8, 8>}, {pipeline_mode = #tpu.pipeline_mode<synchronous>, transform_indices = @transform_2, window_bounds = array<i64: 9, 1, 256>}, {pipeline_mode = #tpu.pipeline_mode<synchronous>, transform_indices = @transform_3, window_bounds = array<i64: 8, 1>}, {pipeline_mode = #tpu.pipeline_mode<synchronous>, transform_indices = @transform_4, window_bounds = array<i64: 8, 256>}]} {
    %c0 = arith.constant 0 : index
    %c0_0 = arith.constant 0 : index
    %0 = vector.load %arg1[%c0, %c0_0] : memref<8x256xf32, #tpu.memory_space<vmem>>, vector<8x256xf32>
    %c4 = arith.constant 4 : index
    %c0_1 = arith.constant 0 : index
    %c0_2 = arith.constant 0 : index
    %1 = vector.load %arg2[%c4, %c0_1, %c0_2] : memref<9x8x8xf32, #tpu.memory_space<vmem>>, vector<1x8x8xf32>
    %2 = vector.shape_cast %1 : vector<1x8x8xf32> to vector<8x8xf32>
    %cst = arith.constant dense<0.000000e+00> : vector<8x256xf32>
    %3 = tpu.matmul %2, %0, %cst {dimension_numbers = #tpu.dot_dimension_numbers<[1], [0], [0], [1], [0, 0, 1, 1], [], []>} : vector<8x8xf32>, vector<8x256xf32>, vector<8x256xf32> -> vector<8x256xf32>
    %c17_i32 = arith.constant 17 : i32
    %4 = tpu.dynamic_rotate %0 by %c17_i32 dim 1 : vector<8x256xf32>, i32 -> vector<8x256xf32>
    %c0_3 = arith.constant 0 : index
    %c0_4 = arith.constant 0 : index
    %c0_5 = arith.constant 0 : index
    %5 = vector.load %arg3[%c0_3, %c0_4, %c0_5] : memref<9x1x256xf32, #tpu.memory_space<vmem>>, vector<1x1x256xf32>
    %6 = vector.shape_cast %5 : vector<1x1x256xf32> to vector<1x256xf32>
    %7 = vector.broadcast %6 : vector<1x256xf32> to vector<8x256xf32>
    %8 = arith.mulf %4, %7 : vector<8x256xf32>
    %c0_6 = arith.constant 0 : index
    %c0_7 = arith.constant 0 : index
    %c0_8 = arith.constant 0 : index
    %9 = vector.load %arg2[%c0_6, %c0_7, %c0_8] : memref<9x8x8xf32, #tpu.memory_space<vmem>>, vector<1x8x8xf32>
    %10 = vector.shape_cast %9 : vector<1x8x8xf32> to vector<8x8xf32>
    %cst_9 = arith.constant dense<0.000000e+00> : vector<8x256xf32>
    %11 = tpu.matmul %10, %8, %cst_9 {dimension_numbers = #tpu.dot_dimension_numbers<[1], [0], [0], [1], [0, 0, 1, 1], [], []>} : vector<8x8xf32>, vector<8x256xf32>, vector<8x256xf32> -> vector<8x256xf32>
    %12 = arith.addf %3, %11 : vector<8x256xf32>
    %c16_i32 = arith.constant 16 : i32
    %13 = tpu.dynamic_rotate %0 by %c16_i32 dim 1 : vector<8x256xf32>, i32 -> vector<8x256xf32>
    %c1 = arith.constant 1 : index
    %c0_10 = arith.constant 0 : index
    %c0_11 = arith.constant 0 : index
    %14 = vector.load %arg3[%c1, %c0_10, %c0_11] : memref<9x1x256xf32, #tpu.memory_space<vmem>>, vector<1x1x256xf32>
    %15 = vector.shape_cast %14 : vector<1x1x256xf32> to vector<1x256xf32>
    %16 = vector.broadcast %15 : vector<1x256xf32> to vector<8x256xf32>
    %17 = arith.mulf %13, %16 : vector<8x256xf32>
    %c1_12 = arith.constant 1 : index
    %c0_13 = arith.constant 0 : index
    %c0_14 = arith.constant 0 : index
    %18 = vector.load %arg2[%c1_12, %c0_13, %c0_14] : memref<9x8x8xf32, #tpu.memory_space<vmem>>, vector<1x8x8xf32>
    %19 = vector.shape_cast %18 : vector<1x8x8xf32> to vector<8x8xf32>
    %cst_15 = arith.constant dense<0.000000e+00> : vector<8x256xf32>
    %20 = tpu.matmul %19, %17, %cst_15 {dimension_numbers = #tpu.dot_dimension_numbers<[1], [0], [0], [1], [0, 0, 1, 1], [], []>} : vector<8x8xf32>, vector<8x256xf32>, vector<8x256xf32> -> vector<8x256xf32>
    %21 = arith.addf %12, %20 : vector<8x256xf32>
    %c15_i32 = arith.constant 15 : i32
    %22 = tpu.dynamic_rotate %0 by %c15_i32 dim 1 : vector<8x256xf32>, i32 -> vector<8x256xf32>
    %c2 = arith.constant 2 : index
    %c0_16 = arith.constant 0 : index
    %c0_17 = arith.constant 0 : index
    %23 = vector.load %arg3[%c2, %c0_16, %c0_17] : memref<9x1x256xf32, #tpu.memory_space<vmem>>, vector<1x1x256xf32>
    %24 = vector.shape_cast %23 : vector<1x1x256xf32> to vector<1x256xf32>
    %25 = vector.broadcast %24 : vector<1x256xf32> to vector<8x256xf32>
    %26 = arith.mulf %22, %25 : vector<8x256xf32>
    %c2_18 = arith.constant 2 : index
    %c0_19 = arith.constant 0 : index
    %c0_20 = arith.constant 0 : index
    %27 = vector.load %arg2[%c2_18, %c0_19, %c0_20] : memref<9x8x8xf32, #tpu.memory_space<vmem>>, vector<1x8x8xf32>
    %28 = vector.shape_cast %27 : vector<1x8x8xf32> to vector<8x8xf32>
    %cst_21 = arith.constant dense<0.000000e+00> : vector<8x256xf32>
    %29 = tpu.matmul %28, %26, %cst_21 {dimension_numbers = #tpu.dot_dimension_numbers<[1], [0], [0], [1], [0, 0, 1, 1], [], []>} : vector<8x8xf32>, vector<8x256xf32>, vector<8x256xf32> -> vector<8x256xf32>
    %30 = arith.addf %21, %29 : vector<8x256xf32>
    %c1_i32 = arith.constant 1 : i32
    %31 = tpu.dynamic_rotate %0 by %c1_i32 dim 1 : vector<8x256xf32>, i32 -> vector<8x256xf32>
    %c3 = arith.constant 3 : index
    %c0_22 = arith.constant 0 : index
    %c0_23 = arith.constant 0 : index
    %32 = vector.load %arg3[%c3, %c0_22, %c0_23] : memref<9x1x256xf32, #tpu.memory_space<vmem>>, vector<1x1x256xf32>
    %33 = vector.shape_cast %32 : vector<1x1x256xf32> to vector<1x256xf32>
    %34 = vector.broadcast %33 : vector<1x256xf32> to vector<8x256xf32>
    %35 = arith.mulf %31, %34 : vector<8x256xf32>
    %c3_24 = arith.constant 3 : index
    %c0_25 = arith.constant 0 : index
    %c0_26 = arith.constant 0 : index
    %36 = vector.load %arg2[%c3_24, %c0_25, %c0_26] : memref<9x8x8xf32, #tpu.memory_space<vmem>>, vector<1x8x8xf32>
    %37 = vector.shape_cast %36 : vector<1x8x8xf32> to vector<8x8xf32>
    %cst_27 = arith.constant dense<0.000000e+00> : vector<8x256xf32>
    %38 = tpu.matmul %37, %35, %cst_27 {dimension_numbers = #tpu.dot_dimension_numbers<[1], [0], [0], [1], [0, 0, 1, 1], [], []>} : vector<8x8xf32>, vector<8x256xf32>, vector<8x256xf32> -> vector<8x256xf32>
    %39 = arith.addf %30, %38 : vector<8x256xf32>
    %c255_i32 = arith.constant 255 : i32
    %40 = tpu.dynamic_rotate %0 by %c255_i32 dim 1 : vector<8x256xf32>, i32 -> vector<8x256xf32>
    %c5 = arith.constant 5 : index
    %c0_28 = arith.constant 0 : index
    %c0_29 = arith.constant 0 : index
    %41 = vector.load %arg3[%c5, %c0_28, %c0_29] : memref<9x1x256xf32, #tpu.memory_space<vmem>>, vector<1x1x256xf32>
    %42 = vector.shape_cast %41 : vector<1x1x256xf32> to vector<1x256xf32>
    %43 = vector.broadcast %42 : vector<1x256xf32> to vector<8x256xf32>
    %44 = arith.mulf %40, %43 : vector<8x256xf32>
    %c5_30 = arith.constant 5 : index
    %c0_31 = arith.constant 0 : index
    %c0_32 = arith.constant 0 : index
    %45 = vector.load %arg2[%c5_30, %c0_31, %c0_32] : memref<9x8x8xf32, #tpu.memory_space<vmem>>, vector<1x8x8xf32>
    %46 = vector.shape_cast %45 : vector<1x8x8xf32> to vector<8x8xf32>
    %cst_33 = arith.constant dense<0.000000e+00> : vector<8x256xf32>
    %47 = tpu.matmul %46, %44, %cst_33 {dimension_numbers = #tpu.dot_dimension_numbers<[1], [0], [0], [1], [0, 0, 1, 1], [], []>} : vector<8x8xf32>, vector<8x256xf32>, vector<8x256xf32> -> vector<8x256xf32>
    %48 = arith.addf %39, %47 : vector<8x256xf32>
    %c241_i32 = arith.constant 241 : i32
    %49 = tpu.dynamic_rotate %0 by %c241_i32 dim 1 : vector<8x256xf32>, i32 -> vector<8x256xf32>
    %c6 = arith.constant 6 : index
    %c0_34 = arith.constant 0 : index
    %c0_35 = arith.constant 0 : index
    %50 = vector.load %arg3[%c6, %c0_34, %c0_35] : memref<9x1x256xf32, #tpu.memory_space<vmem>>, vector<1x1x256xf32>
    %51 = vector.shape_cast %50 : vector<1x1x256xf32> to vector<1x256xf32>
    %52 = vector.broadcast %51 : vector<1x256xf32> to vector<8x256xf32>
    %53 = arith.mulf %49, %52 : vector<8x256xf32>
    %c6_36 = arith.constant 6 : index
    %c0_37 = arith.constant 0 : index
    %c0_38 = arith.constant 0 : index
    %54 = vector.load %arg2[%c6_36, %c0_37, %c0_38] : memref<9x8x8xf32, #tpu.memory_space<vmem>>, vector<1x8x8xf32>
    %55 = vector.shape_cast %54 : vector<1x8x8xf32> to vector<8x8xf32>
    %cst_39 = arith.constant dense<0.000000e+00> : vector<8x256xf32>
    %56 = tpu.matmul %55, %53, %cst_39 {dimension_numbers = #tpu.dot_dimension_numbers<[1], [0], [0], [1], [0, 0, 1, 1], [], []>} : vector<8x8xf32>, vector<8x256xf32>, vector<8x256xf32> -> vector<8x256xf32>
    %57 = arith.addf %48, %56 : vector<8x256xf32>
    %c240_i32 = arith.constant 240 : i32
    %58 = tpu.dynamic_rotate %0 by %c240_i32 dim 1 : vector<8x256xf32>, i32 -> vector<8x256xf32>
    %c7 = arith.constant 7 : index
    %c0_40 = arith.constant 0 : index
    %c0_41 = arith.constant 0 : index
    %59 = vector.load %arg3[%c7, %c0_40, %c0_41] : memref<9x1x256xf32, #tpu.memory_space<vmem>>, vector<1x1x256xf32>
    %60 = vector.shape_cast %59 : vector<1x1x256xf32> to vector<1x256xf32>
    %61 = vector.broadcast %60 : vector<1x256xf32> to vector<8x256xf32>
    %62 = arith.mulf %58, %61 : vector<8x256xf32>
    %c7_42 = arith.constant 7 : index
    %c0_43 = arith.constant 0 : index
    %c0_44 = arith.constant 0 : index
    %63 = vector.load %arg2[%c7_42, %c0_43, %c0_44] : memref<9x8x8xf32, #tpu.memory_space<vmem>>, vector<1x8x8xf32>
    %64 = vector.shape_cast %63 : vector<1x8x8xf32> to vector<8x8xf32>
    %cst_45 = arith.constant dense<0.000000e+00> : vector<8x256xf32>
    %65 = tpu.matmul %64, %62, %cst_45 {dimension_numbers = #tpu.dot_dimension_numbers<[1], [0], [0], [1], [0, 0, 1, 1], [], []>} : vector<8x8xf32>, vector<8x256xf32>, vector<8x256xf32> -> vector<8x256xf32>
    %66 = arith.addf %57, %65 : vector<8x256xf32>
    %c239_i32 = arith.constant 239 : i32
    %67 = tpu.dynamic_rotate %0 by %c239_i32 dim 1 : vector<8x256xf32>, i32 -> vector<8x256xf32>
    %c8 = arith.constant 8 : index
    %c0_46 = arith.constant 0 : index
    %c0_47 = arith.constant 0 : index
    %68 = vector.load %arg3[%c8, %c0_46, %c0_47] : memref<9x1x256xf32, #tpu.memory_space<vmem>>, vector<1x1x256xf32>
    %69 = vector.shape_cast %68 : vector<1x1x256xf32> to vector<1x256xf32>
    %70 = vector.broadcast %69 : vector<1x256xf32> to vector<8x256xf32>
    %71 = arith.mulf %67, %70 : vector<8x256xf32>
    %c8_48 = arith.constant 8 : index
    %c0_49 = arith.constant 0 : index
    %c0_50 = arith.constant 0 : index
    %72 = vector.load %arg2[%c8_48, %c0_49, %c0_50] : memref<9x8x8xf32, #tpu.memory_space<vmem>>, vector<1x8x8xf32>
    %73 = vector.shape_cast %72 : vector<1x8x8xf32> to vector<8x8xf32>
    %cst_51 = arith.constant dense<0.000000e+00> : vector<8x256xf32>
    %74 = tpu.matmul %73, %71, %cst_51 {dimension_numbers = #tpu.dot_dimension_numbers<[1], [0], [0], [1], [0, 0, 1, 1], [], []>} : vector<8x8xf32>, vector<8x256xf32>, vector<8x256xf32> -> vector<8x256xf32>
    %75 = arith.addf %66, %74 : vector<8x256xf32>
    %c0_52 = arith.constant 0 : index
    %c0_53 = arith.constant 0 : index
    %76 = vector.load %arg4[%c0_52, %c0_53] : memref<8x1xf32, #tpu.memory_space<vmem>>, vector<8x1xf32>
    %77 = vector.broadcast %76 : vector<8x1xf32> to vector<8x256xf32>
    %78 = arith.addf %75, %77 : vector<8x256xf32>
    %c0_54 = arith.constant 0 : index
    %c0_55 = arith.constant 0 : index
    %79 = vector.load %arg5[%c0_54, %c0_55] : memref<8x256xf32, #tpu.memory_space<vmem>>, vector<8x256xf32>
    tpu.vector_store %arg5[%c0_54, %c0_55], %78 {strides = array<i32>} : memref<8x256xf32, #tpu.memory_space<vmem>>, vector<8x256xf32>,
    return
  }
  func.func @transform_0(%arg0: i32) -> (i32, i32) {
    %c0_i32 = arith.constant 0 : i32
    %c0_i32_0 = arith.constant 0 : i32
    %c0_i32_1 = arith.constant 0 : i32
    return %c0_i32, %c0_i32_0 : i32, i32
  }
  func.func @transform_1(%arg0: i32) -> (i32, i32, i32) {
    %c0_i32 = arith.constant 0 : i32
    %c0_i32_0 = arith.constant 0 : i32
    %c0_i32_1 = arith.constant 0 : i32
    %c0_i32_2 = arith.constant 0 : i32
    return %c0_i32, %c0_i32_0, %c0_i32_1 : i32, i32, i32
  }
  func.func @transform_2(%arg0: i32) -> (i32, i32, i32) {
    %c0_i32 = arith.constant 0 : i32
    %c0_i32_0 = arith.constant 0 : i32
    %c0_i32_1 = arith.constant 0 : i32
    %c0_i32_2 = arith.constant 0 : i32
    return %c0_i32, %c0_i32_0, %c0_i32_1 : i32, i32, i32
  }
  func.func @transform_3(%arg0: i32) -> (i32, i32) {
    %c0_i32 = arith.constant 0 : i32
    %c0_i32_0 = arith.constant 0 : i32
    %c0_i32_1 = arith.constant 0 : i32
    return %c0_i32, %c0_i32_0 : i32, i32
  }
  func.func @transform_4(%arg0: i32) -> (i32, i32) {
    %c0_i32 = arith.constant 0 : i32
    %c0_i32_0 = arith.constant 0 : i32
    %c0_i32_1 = arith.constant 0 : i32
    return %c0_i32, %c0_i32_0 : i32, i32
  }
}

</mosaic_0001>

<bundles_post_ra>
// kernel: tile.0
= control target key start
LH: loop header
LB: loop body
LE: loop exit
PB: predicated region body
PF: predicated region fallthrough
CT: control target
= control target key end

     0   :  { %s35_s8 = smov 125   ;;  %vm8_vm0 = vcmask 7168   ;;  %s36_s11 = smov 126   ;;  %s62_s0 = inlined_call_operand.vmem [shape: f32[2,4], index: 0, kind: input, shape index: {}]   ;;  %s63_s1 = inlined_call_operand.vmem [shape: f32[8,1], index: 1, kind: output, shape index: {}]  }
   0x1   :  { %v5_v0 = vld [vmem:[%s62_s0] sm:$0x3]  ;;  %s34_s0 = smov 127  }
   0x2   :  { %6 = vst [vmem:[#allocation0] sm:$0x3] %v5_v0 }
   0x9   :  { %v10_v1 = vld [vmem:[#allocation0] sm:$0x3]  }
   0xa   :  { %v22_v2 = vld [vmem:[#allocation0] sm:$0x3]   ;;  %11 = vrot.lane.b32.xlu0 %v10_v1, %s34_s0 }
   0xb   :  { %23 = vrot.lane.b32.xlu1 %v22_v2, %s35_s8  ;;  %v7_v3 = vld [vmem:[#allocation0] sm:$0x3]  }
   0xc   :  { %v16_v4 = vld [vmem:[#allocation0] sm:$0x3]   ;;  %9 = vst.msk [vmem:[%s63_s1] ss:$4 sm:$0x3] %vm8_vm0, %v7_v3  }
   0xe   :  { %17 = vrot.lane.b32.xlu0 %v16_v4, %s36_s11 }
  0x7c   :  { %v12_v5 = vpop.permute.xlu0 %11  }
  0x7d   :  { %v24_v6 = vpop.permute.xlu1 %23   ;;  %28 = vst.msk [vmem:[%s63_s1 + $0x1] ss:$4 sm:$0x3] %vm8_vm0, %v12_v5  }
  0x7e   :  { %30 = vst.msk [vmem:[%s63_s1 + $0x3] ss:$4 sm:$0x3] %vm8_vm0, %v24_v6  }
  0x80   :  { %v18_v7 = vpop.permute.xlu0 %17  }
  0x81   :  { %29 = vst.msk [vmem:[%s63_s1 + $0x2] ss:$4 sm:$0x3] %vm8_vm0, %v18_v7  }

// kernel: tile.8
= control target key start
LH: loop header
LB: loop body
LE: loop exit
PB: predicated region body
PF: predicated region fallthrough
CT: control target
= control target key end

     0   :  { %s22_s0 = inlined_call_operand.vmem [shape: f32[4], index: 0, kind: input, shape index: {}]   ;;  %s23_s1 = inlined_call_operand.vmem [shape: f32[2,4], index: 1, kind: output, shape index: {}]  }
   0x1   :  { %v4_v0 = vld [vmem:[%s22_s0] ss:$0 sm:$0xff] }
   0x2   :  { %5 = vst [vmem:[%s23_s1] sm:$0x3] %v4_v0 }

// kernel: invertible_conv_forward.1
= control target key start
LH: loop header
LB: loop body
LE: loop exit
PB: predicated region body
PF: predicated region fallthrough
CT: control target
= control target key end

     0   :  { %v943_v1 = vmov 0.0   ;;  %s944_s17 = smov 16   ;;  %s945_s18 = smov 17   ;;  %vm45_vm0 = vcmask 64512   ;;  %v950_v4 = vmov 0   ;;  %v25_v6 = vlaneseq  ;;  %s1096_s0 = inlined_call_operand.vmem [shape: f32[8,256], index: 0, kind: input, shape index: {}]   ;;  %s1097_s1 = inlined_call_operand.vmem [shape: f32[9,8,8], index: 1, kind: input, shape index: {}]   ;;  %s1098_s3 = inlined_call_operand.vmem [shape: f32[8,1], index: 3, kind: input, shape index: {}]   ;;  %s1099_s2 = inlined_call_operand.vmem [shape: f32[9,1,256], index: 2, kind: input, shape index: {}]   ;;  %s1100_s4 = inlined_call_operand.vmem [shape: f32[8,256], index: 4, kind: output, shape index: {}]  }
   0x1   :  { %v17_v0 = vld [vmem:[%s1096_s0] sm:$0xff]  ;;  %113 = vmatprep.mubr.f32.mxu0 %v943_v1  ;;  %187 = vmatprep.mubr.f32.mxu1 %v943_v1  ;;  %v18_v2 = vld [vmem:[%s1096_s0 + $0x8] sm:$0xff]  ;;  %s946_s23 = smov 15   ;;  %s947_s24 = smov 1   ;;  %v915_v44 = vld [vmem:[%s1097_s1 + $0x10] sm:$0xff] }
   0x2   :  { %194 = vrot.lane.b32.xlu1 %v17_v0, %s944_s17  ;;  %21 = vrot.lane.b32.xlu0 %v17_v0, %s945_s18  ;;  %v908_v3 = vld [vmem:[%s1097_s1 + $0x20] sm:$0xff]  ;;  %s948_s0 = smov 127   ;;  %s949_s25 = smov 113   ;;  %v33_v7 = vshrl.u32 %v25_v6, 7  ;;  %v994_v8 = vand.u32 127, %v25_v6  ;;  %v912_v43 = vld [vmem:[%s1097_s1 + $0x8] sm:$0xff] }
   0x3   :  { %153 = vmatprep.subr.mxu1 %v18_v2  ;;  %942 = vset.pattern.permute.xlu0 %v950_v4  ;;  %s951_s26 = smov 112   ;;  %s952_s27 = smov 111   ;;  %v894_v5 = vld [vmem:[%s1098_s3] sm:$0xff]  ;;  %v920_v42 = vld [vmem:[%s1099_s2 + $0xa] sm:$0x3]  ;;  %v918_v54 = vld [vmem:[%s1097_s1 + $0x18] sm:$0xff] }
   0x4   :  { %154 = vmatpush1.msra.mxu1 %v17_v0  ;;  %v996_v9 = vsub.s32 0, %v33_v7  ;;  %v998_v10 = vsub.s32 1, %v33_v7  ;;  %v30_v11 = vld [vmem:[%s1099_s2] sm:$0x3]  ;;  %v911_v14 = vld [vmem:[%s1099_s2 + $0x2] sm:$0x3] }
   0x5   :  { %910 = vmatmul.mubr.msk.f32.vlgmr.msra.gmra.mxu1 %vm45_vm0, %v908_v3  ;;  %vm198_vm1 = vcmp.lt.s32.totalorder %v994_v8, 16  ;;  %vm27_vm2 = vcmp.lt.s32.totalorder %v994_v8, 17  ;;  %v914_v16 = vld [vmem:[%s1099_s2 + $0x4] sm:$0x3]  ;;  %vm298_vm3 = vcmp.lt.s32.totalorder %v994_v8, 15  ;;  %vm398_vm4 = vcmp.lt.s32.totalorder %v994_v8, 1 }
   0x6   :  { %196 = vrot.lane.b32.xlu1 %v18_v2, %s944_s17  ;;  %23 = vrot.lane.b32.xlu0 %v18_v2, %s945_s18  ;;  %v39_v15 = vrot.slane %v30_v11, %v998_v10  ;;  %v35_v17 = vrot.slane %v30_v11, %v996_v9  ;;  %v207_v18 = vrot.slane %v911_v14, %v996_v9  ;;  %v917_v30 = vld [vmem:[%s1099_s2 + $0x6] sm:$0x3]  ;;  %vm498_vm5 = vcmp.lt.s32.totalorder %v994_v8, 127  ;;  %v923_v53 = vld [vmem:[%s1099_s2 + $0xc] sm:$0x3] }
   0x7   :  { %385 = vmatprep.mubr.f32.mxu1 %v943_v1  ;;  %v211_v19 = vrot.slane %v911_v14, %v998_v10  ;;  %v307_v25 = vrot.slane %v914_v16, %v996_v9  ;;  %v311_v28 = vrot.slane %v914_v16, %v998_v10  ;;  %v44_v31 = vld [vmem:[%s1097_s1] sm:$0xff]  ;;  %v407_v38 = vrot.slane %v917_v30, %v996_v9  ;;  %v926_v63 = vld [vmem:[%s1099_s2 + $0xe] sm:$0x3]  ;;  %v924_v14 = vld [vmem:[%s1097_s1 + $0x30] sm:$0xff] }
   0x8   :  { %v411_v41 = vrot.slane %v917_v30, %v998_v10  ;;  %v507_v49 = vrot.slane %v920_v42, %v996_v9  ;;  %v511_v52 = vrot.slane %v920_v42, %v998_v10  ;;  %vm598_vm6 = vcmp.lt.s32.totalorder %v994_v8, 113 }
   0x9   :  { %v607_v61 = vrot.slane %v923_v53, %v996_v9  ;;  %v611_v62 = vrot.slane %v923_v53, %v998_v10  ;;  %vm698_vm7 = vcmp.lt.s32.totalorder %v994_v8, 112  ;;  %v707_v11 = vrot.slane %v926_v63, %v996_v9 }
   0xa   :  { %296 = vrot.lane.b32.xlu1 %v18_v2, %s946_s23  ;;  %294 = vrot.lane.b32.xlu0 %v17_v0, %s946_s23  ;;  %vm798_vm8 = vcmp.lt.s32.totalorder %v994_v8, 111 }
   0xe   :  { %396 = vrot.lane.b32.xlu1 %v18_v2, %s947_s24  ;;  %394 = vrot.lane.b32.xlu0 %v17_v0, %s947_s24 }
  0x12   :  { %496 = vrot.lane.b32.xlu1 %v18_v2, %s948_s0  ;;  %494 = vrot.lane.b32.xlu0 %v17_v0, %s948_s0 }
  0x16   :  { %596 = vrot.lane.b32.xlu1 %v18_v2, %s949_s25  ;;  %594 = vrot.lane.b32.xlu0 %v17_v0, %s949_s25 }
  0x1a   :  { %696 = vrot.lane.b32.xlu1 %v18_v2, %s951_s26  ;;  %694 = vrot.lane.b32.xlu0 %v17_v0, %s951_s26 }
  0x1e   :  { %796 = vrot.lane.b32.xlu1 %v18_v2, %s952_s27  ;;  %794 = vrot.lane.b32.xlu0 %v17_v0, %s952_s27  ;;  %v921_v0 = vld [vmem:[%s1097_s1 + $0x28] sm:$0xff] }
  0x22   :  { %897 = vperm.xlu0 %942, %v894_v5  }
  0x74   :  { %v195_v12 = vpop.permute.xlu1 %194  ;;  %v22_v13 = vpop.permute.xlu0 %21 }
  0x78   :  { %v197_v20 = vpop.permute.xlu1 %196  ;;  %v24_v21 = vpop.permute.xlu0 %23 }
  0x79   :  { %v199_v22 = vsel %vm198_vm1, %v195_v12, %v197_v20  ;;  %v29_v23 = vsel %vm27_vm2, %v24_v21, %v22_v13  ;;  %v28_v24 = vsel %vm27_vm2, %v22_v13, %v24_v21  ;;  %v200_v26 = vsel %vm198_vm1, %v197_v20, %v195_v12  ;;  %v929_v13 = vld [vmem:[%s1099_s2 + $0x10] sm:$0x3] }
  0x7a   :  { %v43_v27 = vmul.f32 %v39_v15, %v28_v24  ;;  %v42_v29 = vmul.f32 %v35_v17, %v29_v23  ;;  %v215_v32 = vmul.f32 %v211_v19, %v199_v22  ;;  %v214_v35 = vmul.f32 %v207_v18, %v200_v26  ;;  %v927_v23 = vld [vmem:[%s1097_s1 + $0x38] sm:$0xff] }
  0x7b   :  { %v711_v12 = vrot.slane %v926_v63, %v998_v10  ;;  %v807_v21 = vrot.slane %v929_v13, %v996_v9  ;;  %v811_v22 = vrot.slane %v929_v13, %v998_v10  ;;  %v930_v9 = vld [vmem:[%s1097_s1 + $0x40] sm:$0xff] }
  0x7c   :  { %v297_v33 = vpop.permute.xlu1 %296  ;;  %79 = vmatprep.subr.mxu0 %v43_v27  ;;  %v295_v34 = vpop.permute.xlu0 %294 }
  0x7d   :  { %v299_v36 = vsel %vm298_vm3, %v295_v34, %v297_v33  ;;  %v300_v37 = vsel %vm298_vm3, %v297_v33, %v295_v34  ;;  %80 = vmatpush1.msra.mxu0 %v42_v29 }
  0x7e   :  { %v314_v39 = vmul.f32 %v307_v25, %v300_v37  ;;  %v315_v40 = vmul.f32 %v311_v28, %v299_v36  ;;  %251 = vmatprep.subr.mxu0 %v215_v32  ;;  %909 = vmatmul.mubr.msk.f32.vlgmr.msra.gmra.mxu0 %vm45_vm0, %v44_v31 }
  0x7f   :  { %252 = vmatpush1.msra.mxu0 %v214_v35  ;;  %285 = vmatprep.mubr.f32.mxu0 %v943_v1 }
  0x80   :  { %v397_v45 = vpop.permute.xlu1 %396  ;;  %v395_v46 = vpop.permute.xlu0 %394  ;;  %351 = vmatprep.subr.mxu1 %v315_v40 }
  0x81   :  { %v399_v47 = vsel %vm398_vm4, %v395_v46, %v397_v45  ;;  %v400_v48 = vsel %vm398_vm4, %v397_v45, %v395_v46  ;;  %352 = vmatpush1.msra.mxu1 %v314_v39 }
  0x82   :  { %v414_v50 = vmul.f32 %v407_v38, %v400_v48  ;;  %v415_v51 = vmul.f32 %v411_v41, %v399_v47  ;;  %913 = vmatmul.mubr.msk.f32.vlgmr.msra.gmra.mxu0 %vm45_vm0, %v912_v43  ;;  %916 = vmatmul.mubr.msk.f32.vlgmr.msra.gmra.mxu1 %vm45_vm0, %v915_v44 }
  0x83   :  { %485 = vmatprep.mubr.f32.mxu0 %v943_v1  ;;  %585 = vmatprep.mubr.f32.mxu1 %v943_v1 }
  0x84   :  { %v497_v55 = vpop.permute.xlu1 %496  ;;  %451 = vmatprep.subr.mxu0 %v415_v51  ;;  %v495_v56 = vpop.permute.xlu0 %494 }
  0x85   :  { %v499_v57 = vsel %vm498_vm5, %v495_v56, %v497_v55  ;;  %v500_v58 = vsel %vm498_vm5, %v497_v55, %v495_v56  ;;  %452 = vmatpush1.msra.mxu0 %v414_v50 }
  0x86   :  { %v514_v59 = vmul.f32 %v507_v49, %v499_v57  ;;  %v515_v60 = vmul.f32 %v511_v52, %v500_v58  ;;  %919 = vmatmul.mubr.msk.f32.vlgmr.msra.gmra.mxu0 %vm45_vm0, %v918_v54 }
  0x87   :  { %685 = vmatprep.mubr.f32.mxu0 %v943_v1 }
  0x88   :  { %v597_v2 = vpop.permute.xlu1 %596  ;;  %v595_v3 = vpop.permute.xlu0 %594  ;;  %551 = vmatprep.subr.mxu1 %v515_v60 }
  0x89   :  { %v599_v4 = vsel %vm598_vm6, %v595_v3, %v597_v2  ;;  %v600_v5 = vsel %vm598_vm6, %v597_v2, %v595_v3  ;;  %552 = vmatpush1.msra.mxu1 %v514_v59 }
  0x8a   :  { %v614_v6 = vmul.f32 %v607_v61, %v599_v4  ;;  %v615_v7 = vmul.f32 %v611_v62, %v600_v5  ;;  %922 = vmatmul.mubr.msk.f32.vlgmr.msra.gmra.mxu1 %vm45_vm0, %v921_v0 }
  0x8b   :  { %785 = vmatprep.mubr.f32.mxu1 %v943_v1 }
  0x8c   :  { %v697_v15 = vpop.permute.xlu1 %696  ;;  %651 = vmatprep.subr.mxu0 %v615_v7  ;;  %v695_v16 = vpop.permute.xlu0 %694 }
  0x8d   :  { %v699_v17 = vsel %vm698_vm7, %v695_v16, %v697_v15  ;;  %v700_v18 = vsel %vm698_vm7, %v697_v15, %v695_v16  ;;  %652 = vmatpush1.msra.mxu0 %v614_v6 }
  0x8e   :  { %v714_v19 = vmul.f32 %v707_v11, %v699_v17  ;;  %v715_v20 = vmul.f32 %v711_v12, %v700_v18  ;;  %925 = vmatmul.mubr.msk.f32.vlgmr.msra.gmra.mxu0 %vm45_vm0, %v924_v14 }
  0x8f   :  { %885 = vmatprep.mubr.f32.mxu0 %v943_v1 }
  0x90   :  { %v797_v24 = vpop.permute.xlu1 %796  ;;  %v795_v25 = vpop.permute.xlu0 %794  ;;  %751 = vmatprep.subr.mxu1 %v715_v20 }
  0x91   :  { %v799_v26 = vsel %vm798_vm8, %v795_v25, %v797_v24  ;;  %v800_v27 = vsel %vm798_vm8, %v797_v24, %v795_v25  ;;  %752 = vmatpush1.msra.mxu1 %v714_v19 }
  0x92   :  { %v814_v8 = vmul.f32 %v807_v21, %v799_v26  ;;  %v815_v28 = vmul.f32 %v811_v22, %v800_v27  ;;  %928 = vmatmul.mubr.msk.f32.vlgmr.msra.gmra.mxu1 %vm45_vm0, %v927_v23 }
  0x94   :  { %851 = vmatprep.subr.mxu0 %v815_v28 }
  0x95   :  { %852 = vmatpush1.msra.mxu0 %v814_v8 }
  0x96   :  { %931 = vmatmul.mubr.msk.f32.vlgmr.msra.gmra.mxu0 %vm45_vm0, %v930_v9 }
  0x9d   :  { %v898_v57 = vpop.permute.xlu0 %897 }
  0xc5   :  { %v189_v10 = vpop.f32.mrf.mxu1 }
  0xc7   :  { %v191_v29 = vpop.f32.mrf.mxu1 }
 0x13e   :  { %v115_v1 = vpop.f32.mrf.mxu0 }
 0x13f   :  { %v190_v30 = vadd.f32 %v189_v10, %v115_v1 }
 0x140   :  { %v117_v31 = vpop.f32.mrf.mxu0 }
 0x141   :  { %v192_v32 = vadd.f32 %v191_v29, %v117_v31 }
 0x142   :  { %v287_v33 = vpop.f32.mrf.mxu0  ;;  %v387_v34 = vpop.f32.mrf.mxu1 }
 0x143   :  { %v292_v35 = vadd.f32 %v287_v33, %v190_v30 }
 0x144   :  { %v289_v36 = vpop.f32.mrf.mxu0  ;;  %v389_v39 = vpop.f32.mrf.mxu1 }
 0x145   :  { %v293_v37 = vadd.f32 %v289_v36, %v192_v32  ;;  %v392_v38 = vadd.f32 %v387_v34, %v292_v35 }
 0x146   :  { %v487_v40 = vpop.f32.mrf.mxu0 }
 0x147   :  { %v393_v41 = vadd.f32 %v389_v39, %v293_v37  ;;  %v492_v42 = vadd.f32 %v487_v40, %v392_v38 }
 0x148   :  { %v489_v43 = vpop.f32.mrf.mxu0 }
 0x149   :  { %v493_v45 = vadd.f32 %v489_v43, %v393_v41 }
 0x14a   :  { %v587_v44 = vpop.f32.mrf.mxu1 }
 0x14b   :  { %v592_v46 = vadd.f32 %v587_v44, %v492_v42 }
 0x14c   :  { %v589_v47 = vpop.f32.mrf.mxu1 }
 0x14d   :  { %v593_v49 = vadd.f32 %v589_v47, %v493_v45 }
 0x14e   :  { %v687_v48 = vpop.f32.mrf.mxu0 }
 0x14f   :  { %v692_v50 = vadd.f32 %v687_v48, %v592_v46 }
 0x150   :  { %v689_v51 = vpop.f32.mrf.mxu0 }
 0x151   :  { %v693_v54 = vadd.f32 %v689_v51, %v593_v49 }
 0x152   :  { %v787_v52 = vpop.f32.mrf.mxu1 }
 0x153   :  { %v792_v55 = vadd.f32 %v787_v52, %v692_v50 }
 0x154   :  { %v789_v53 = vpop.f32.mrf.mxu1 }
 0x155   :  { %v793_v58 = vadd.f32 %v789_v53, %v693_v54 }
 0x156   :  { %v887_v56 = vpop.f32.mrf.mxu0 }
 0x157   :  { %v892_v59 = vadd.f32 %v887_v56, %v792_v55 }
 0x158   :  { %v889_v60 = vpop.f32.mrf.mxu0 }
 0x159   :  { %v893_v61 = vadd.f32 %v889_v60, %v793_v58  ;;  %v900_v62 = vadd.f32 %v898_v57, %v892_v59 }
 0x15b   :  { %v901_v63 = vadd.f32 %v898_v57, %v893_v61  ;;  %902 = vst [vmem:[%s1100_s4] sm:$0xff] %v900_v62 }
 0x15d   :  { %903 = vst [vmem:[%s1100_s4 + $0x8] sm:$0xff] %v901_v63 }

</bundles_post_ra>
